<compile_context>
chip_gen: v7x
topology: tpu7x:2x2x1
jax: 0.10.0
libtpu: 0.0.40
codegen_flags: <defaults>
</compile_context>

<pallas_src>
import functools
import math

import jax
import jax.numpy as jnp
import numpy as np
from jax.experimental import pallas as pl
from jax.experimental.pallas import tpu as pltpu


# --------------------------------------------------------------------------
# Kernel A: per-batch drop mask from the padded Bernoulli seed grid.
# --------------------------------------------------------------------------
def _block_mask_kernel(seed_ref, drop_ref, *, block_size, H, W,
                       conv_out_h, conv_out_w):
    """drop[0, i, j] = OR over a (bs, bs) window of the padded seed grid."""
    seed = seed_ref[...]                          # (1, Hp, Wp), values in {0,1}
    Hn = H + block_size - 1

    # Separable max: OR over kj (lane shifts) into a column-max buffer ...
    col = seed[:, :Hn, 0:W]
    for kj in range(1, block_size):
        col = jnp.maximum(col, seed[:, :Hn, kj:kj + W])
    # ... then OR over ki (sublane shifts): bs^2 -> 2*bs shifted maxima.
    drop = col[:, 0:H, :]
    for ki in range(1, block_size):
        drop = jnp.maximum(drop, col[:, ki:ki + H, :])

    # Rows / cols past the reference conv-output extent are zero-padded in the
    # PyTorch module (never dropped).  Statically skipped unless block_size is
    # very large relative to H/W.
    if conv_out_h < H:
        rows = jax.lax.broadcasted_iota(jnp.int32, (1, H, 1), 1)
        drop = jnp.where(rows < conv_out_h, drop, 0.0)
    if conv_out_w < W:
        cols = jax.lax.broadcasted_iota(jnp.int32, (1, 1, W), 2)
        drop = jnp.where(cols < conv_out_w, drop, 0.0)

    drop_ref[...] = drop
    # TODO(synk): emitting the mask lane-dense as (1, 1, H*W) directly would
    # save a tiny (1/C of x's traffic) relayout in the wrapper, but the
    # in-kernel (H, W)->(H*W,) reshape is a relayout whose lowering support is
    # version-dependent, so the mask is kept 2-D here.


# --------------------------------------------------------------------------
# Kernel B1 (stats): read-only pass -> per-tile partial sum of t.
# --------------------------------------------------------------------------
def _stats_kernel(x_ref, drop_ref, psum_ref):
    x = x_ref[...].astype(jnp.float32)            # (t_n, C, t_hw), lane-dense
    drop = drop_ref[...]                          # (t_n, 1, t_hw)
    min_c = jnp.min(x, axis=1, keepdims=True)
    max_c = jnp.max(x, axis=1, keepdims=True)
    coef = drop / (max_c - min_c + 1e-8)          # one exact divide per pixel
    t = (x - min_c) * coef                        # drop * x_norm
    psum_ref[...] = jnp.sum(t, axis=(0, 1, 2),
                            keepdims=True).reshape(1, 1, 1, 1)


# --------------------------------------------------------------------------
# Kernel B2 (apply): reads x + global scale, writes final scaled output.
# --------------------------------------------------------------------------
def _apply_kernel(scale_ref, x_ref, drop_ref, out_ref):
    scale = scale_ref[0]                          # global renorm scalar (SMEM)
    x = x_ref[...].astype(jnp.float32)            # (t_n, C, t_hw)
    drop = drop_ref[...]                          # (t_n, 1, t_hw)
    min_c = jnp.min(x, axis=1, keepdims=True)
    max_c = jnp.max(x, axis=1, keepdims=True)
    coef = drop / (max_c - min_c + 1e-8)
    t = (x - min_c) * coef
    # out = scale * x * (1 - t); soft mask never materialized, scale folded in.
    out_ref[...] = (scale * (x - x * t)).astype(out_ref.dtype)


# --------------------------------------------------------------------------
# Block sizing / VMEM budgeting.
# --------------------------------------------------------------------------
def _choose_blocks(N, C, HW, itemsize, target_bytes=4 * 1024 * 1024):
    """Pick (t_n, t_hw) blocks.

    - H*W a multiple of 128: tile the flattened spatial axis lane-dense.
    - Otherwise the last block dim must equal H*W (Mosaic (8,128) rule), so
      the spatial axis stays whole and the batch axis is blocked instead.
    - Batch several images per block when one (C, H*W) slab is small, keeping
      >= 2 grid steps whenever possible so both v7x TensorCores get work.
    """
    if HW % 128 == 0:
        lanes = max(128, (target_bytes // max(1, itemsize * C)) // 128 * 128)
        t_hw = min(HW, lanes)
        while HW % t_hw:
            t_hw -= 128
    else:
        t_hw = HW
    n_hw = HW // t_hw
    blk_bytes = C * t_hw * itemsize
    t_n = 1
    for d in range(N, 0, -1):
        if N % d:
            continue
        if d * blk_bytes <= target_bytes and (n_hw > 1 or N // d >= 2 or N == 1):
            t_n = d
            break
    return t_n, t_hw


def _vmem_limit_bytes(t_n, C, t_hw, itemsize):
    """Budget from the real apply-pass footprint: double-buffered x/out HBM
    blocks + drop blocks + in-kernel f32 working copies."""
    blk = t_n * C * t_hw
    needed = (2 * blk * itemsize          # x blocks (double-buffered)
              + 2 * blk * itemsize        # out blocks (double-buffered)
              + 2 * t_n * t_hw * 4        # drop blocks
              + 3 * blk * 4)              # f32 intermediates
    return int(min(100 * 1024 * 1024, max(32 * 1024 * 1024, int(needed * 1.3))))


# --------------------------------------------------------------------------
# Wrapper.
# --------------------------------------------------------------------------
def dropblock2d_pallas(x, seed_mask, block_size):
    """x: (N, C, H, W); seed_mask: (N, mh, mw) Bernoulli {0,1} float32."""
    N, C, H, W = x.shape
    mh, mw = seed_mask.shape[1], seed_mask.shape[2]
    pad = int(math.ceil(block_size / 2) + 1)
    # Enough zero padding so every (ki, kj) window slice in kernel A is in range.
    bottom = max(0, H + block_size - 1 - pad - mh)
    right = max(0, W + block_size - 1 - pad - mw)
    seed_pad = jnp.pad(seed_mask.astype(jnp.float32),
                       ((0, 0), (pad, bottom), (pad, right)))
    Hp, Wp = seed_pad.shape[1], seed_pad.shape[2]
    conv_out_h = mh + 2 * pad - block_size + 1
    conv_out_w = mw + 2 * pad - block_size + 1

    # ---- kernel A: per-batch (H, W) drop mask, sharded over N ----
    mask_kernel = functools.partial(
        _block_mask_kernel, block_size=block_size, H=H, W=W,
        conv_out_h=conv_out_h, conv_out_w=conv_out_w)
    drop = pl.pallas_call(
        mask_kernel,
        out_shape=jax.ShapeDtypeStruct((N, H, W), jnp.float32),
        grid=(N,),
        in_specs=[pl.BlockSpec((1, Hp, Wp), lambda n: (n, 0, 0))],
        out_specs=pl.BlockSpec((1, H, W), lambda n: (n, 0, 0)),
        compiler_params=pltpu.CompilerParams(
            dimension_semantics=("parallel",)),
    )(seed_pad)

    # ---- lane-dense flattened views + block sizing ----
    HW = H * W
    x_flat = x.reshape(N, C, HW)
    drop_flat = drop.reshape(N, 1, HW)
    itemsize = x.dtype.itemsize
    t_n, t_hw = _choose_blocks(N, C, HW, itemsize)
    n_n, n_hw = N // t_n, HW // t_hw
    cparams = pltpu.CompilerParams(
        dimension_semantics=("parallel", "parallel"),
        vmem_limit_bytes=_vmem_limit_bytes(t_n, C, t_hw, itemsize))

    x_spec = pl.BlockSpec((t_n, C, t_hw), lambda i, j: (i, 0, j))
    drop_spec = pl.BlockSpec((t_n, 1, t_hw), lambda i, j: (i, 0, j))

    # ---- kernel B1 (stats): read x once, emit per-tile partial sum of t ----
    psums = pl.pallas_call(
        _stats_kernel,
        out_shape=jax.ShapeDtypeStruct((n_n, n_hw, 1, 1), jnp.float32),
        grid=(n_n, n_hw),
        in_specs=[x_spec, drop_spec],
        out_specs=pl.BlockSpec((1, 1, 1, 1), lambda i, j: (i, j, 0, 0)),
        compiler_params=cparams,
    )(x_flat, drop_flat)

    # Global renormalization: out *= numel / sum(soft_mask), with
    # sum(soft_mask) = numel - sum(t).  Must stay global; computed here on the
    # tiny per-tile partials and folded into the apply pass as one scalar.
    numel = float(N * C * HW)
    scale = (numel / (numel - jnp.sum(psums))).astype(jnp.float32).reshape(1)

    # ---- kernel B2 (apply): read x again, write final scaled output ----
    out_flat = pl.pallas_call(
        _apply_kernel,
        out_shape=jax.ShapeDtypeStruct((N, C, HW), x.dtype),
        grid=(n_n, n_hw),
        in_specs=[pl.BlockSpec(memory_space=pltpu.MemorySpace.SMEM),
                  x_spec, drop_spec],
        out_specs=pl.BlockSpec((t_n, C, t_hw), lambda i, j: (i, 0, j)),
        compiler_params=cparams,
    )(scale, x_flat, drop_flat)

    # TODO(synk): for extreme C*H*W with H*W not a multiple of 128 (e.g. C=64
    # at 224x224), a channel-tiled stats/apply variant (per-pixel min/max via
    # HBM) would be needed to stay under v7x's 64 MiB VMEM.
    return out_flat.reshape(N, C, H, W)


def dropblock2d_forward(x, key, drop_prob, block_size, training=True):
    """Full forward (training, att=False). Eval / drop_prob==0 returns x."""
    assert x.ndim == 4, "Expected (N, C, H, W)"
    N, C, H, W = x.shape
    if (not training) or drop_prob == 0.0:
        return x
    if block_size > H:
        block_size = H - 1
    delta = block_size // 2
    mh, mw = H - delta, W - delta
    if mh <= 0 or mw <= 0:
        raise ValueError(f"Input of shape {x.shape} is too small for "
                         f"block_size {block_size}")
    gamma = drop_prob / block_size ** 2 * ((H * W) / (mh * mw))
    seed = jax.random.bernoulli(key, gamma, (N, mh, mw)).astype(jnp.float32)
    return dropblock2d_pallas(x, seed, block_size)


def _reference_dropblock(x, seed_mask, block_size):
    """Pure-JAX mirror of the PyTorch forward (training, att=False)."""
    N, C, H, W = x.shape
    delta = block_size // 2
    mh, mw = seed_mask.shape[1], seed_mask.shape[2]
    pad = int(math.ceil(block_size / 2) + 1)
    k = jnp.ones((1, 1, block_size, block_size), jnp.float32)
    conv = jax.lax.conv_general_dilated(
        seed_mask[:, None, :, :].astype(jnp.float32), k, (1, 1),
        [(pad, pad), (pad, pad)], dimension_numbers=("NCHW", "OIHW", "NCHW"))
    in_h, in_w = mh + delta, mw + delta
    h_crop = conv.shape[-2] - in_h
    w_crop = conv.shape[-1] - in_w
    if h_crop > 0:
        conv = conv[:, :, :-h_crop, :]
    if w_crop > 0:
        conv = conv[:, :, :, :-w_crop]
    if h_crop < 0:
        conv = jnp.concatenate(
            [conv, jnp.zeros((N, 1, -h_crop, conv.shape[-1]), conv.dtype)], -2)
    if w_crop < 0:
        conv = jnp.concatenate(
            [conv, jnp.zeros((N, 1, conv.shape[-2], -w_crop), conv.dtype)], -1)
    keep = 1.0 - (conv >= 1).astype(jnp.float32)[:, 0]          # (N, H, W)
    min_c = jnp.min(x, axis=1, keepdims=True)
    max_c = jnp.max(x, axis=1, keepdims=True)
    x_norm = (x - min_c) / (max_c - min_c + 1e-8)
    soft = 1.0 - (1.0 - keep[:, None]) * x_norm
    out = x * soft
    return out * soft.size / jnp.sum(soft)


if __name__ == "__main__":
    drop_prob, block_size = 0.3, 3
    key = jax.random.PRNGKey(0)
    kx, ks = jax.random.split(key)

    x = jax.random.normal(kx, (2, 4, 16, 16), dtype=jnp.float32)
    N, C, H, W = x.shape
    bs = H - 1 if block_size > H else block_size
    delta = bs // 2
    mh, mw = H - delta, W - delta
    gamma = drop_prob / bs ** 2 * ((H * W) / (mh * mw))
    seed = jax.random.bernoulli(ks, gamma, (N, mh, mw)).astype(jnp.float32)

    out = dropblock2d_pallas(x, seed, bs)
    out = jax.block_until_ready(out)

    ref = _reference_dropblock(x, seed, bs)
    np.testing.assert_allclose(np.asarray(out), np.asarray(ref),
                               rtol=1e-5, atol=1e-5)

    # Also exercise the full forward wrapper (gamma + Bernoulli sampling in JAX).
    _ = jax.block_until_ready(dropblock2d_forward(x, ks, drop_prob, bs))

    print("KERNEL_OK")
</pallas_src>

<mosaic_0001>
module attributes {stable_mosaic.version = 11 : i64} {
  func.func @_block_mask_kernel(%arg0: i32, %arg1: memref<1x18x18xf32, #tpu.memory_space<vmem>>, %arg2: memref<1x16x16xf32, #tpu.memory_space<vmem>>) attributes {dimension_semantics = [#tpu.dimension_semantics<parallel>], iteration_bounds = array<i64: 2>, scalar_prefetch = 0 : i64, scratch_operands = 0 : i64, tpu.core_type = #tpu.core_type<tc>, window_params = [{transform_indices = @transform_0, window_bounds = array<i64: 1, 18, 18>}, {transform_indices = @transform_1, window_bounds = array<i64: 1, 16, 16>}]} {
    %c0 = arith.constant 0 : index
    %c0_0 = arith.constant 0 : index
    %c0_1 = arith.constant 0 : index
    %0 = vector.load %arg1[%c0, %c0_0, %c0_1] : memref<1x18x18xf32, #tpu.memory_space<vmem>>, vector<1x18x18xf32>
    %1 = vector.extract_strided_slice %0 {offsets = [0, 0, 0], sizes = [1, 18, 16], strides = [1, 1, 1]} : vector<1x18x18xf32> to vector<1x18x16xf32>
    %2 = vector.extract_strided_slice %0 {offsets = [0, 0, 1], sizes = [1, 18, 16], strides = [1, 1, 1]} : vector<1x18x18xf32> to vector<1x18x16xf32>
    %3 = arith.maximumf %1, %2 : vector<1x18x16xf32>
    %4 = vector.extract_strided_slice %0 {offsets = [0, 0, 2], sizes = [1, 18, 16], strides = [1, 1, 1]} : vector<1x18x18xf32> to vector<1x18x16xf32>
    %5 = arith.maximumf %3, %4 : vector<1x18x16xf32>
    %6 = vector.extract_strided_slice %5 {offsets = [0, 0, 0], sizes = [1, 16, 16], strides = [1, 1, 1]} : vector<1x18x16xf32> to vector<1x16x16xf32>
    %7 = vector.extract_strided_slice %5 {offsets = [0, 1, 0], sizes = [1, 16, 16], strides = [1, 1, 1]} : vector<1x18x16xf32> to vector<1x16x16xf32>
    %8 = arith.maximumf %6, %7 : vector<1x16x16xf32>
    %9 = vector.extract_strided_slice %5 {offsets = [0, 2, 0], sizes = [1, 16, 16], strides = [1, 1, 1]} : vector<1x18x16xf32> to vector<1x16x16xf32>
    %10 = arith.maximumf %8, %9 : vector<1x16x16xf32>
    %c0_2 = arith.constant 0 : index
    %c0_3 = arith.constant 0 : index
    %c0_4 = arith.constant 0 : index
    %11 = vector.load %arg2[%c0_2, %c0_3, %c0_4] : memref<1x16x16xf32, #tpu.memory_space<vmem>>, vector<1x16x16xf32>
    tpu.vector_store %arg2[%c0_2, %c0_3, %c0_4], %10 {strides = array<i32>} : memref<1x16x16xf32, #tpu.memory_space<vmem>>, vector<1x16x16xf32>,
    return
  }
  func.func @transform_0(%arg0: i32) -> (i32, i32, i32) {
    %c0_i32 = arith.constant 0 : i32
    %c0_i32_0 = arith.constant 0 : i32
    %c0_i32_1 = arith.constant 0 : i32
    return %arg0, %c0_i32, %c0_i32_0 : i32, i32, i32
  }
  func.func @transform_1(%arg0: i32) -> (i32, i32, i32) {
    %c0_i32 = arith.constant 0 : i32
    %c0_i32_0 = arith.constant 0 : i32
    %c0_i32_1 = arith.constant 0 : i32
    return %arg0, %c0_i32, %c0_i32_0 : i32, i32, i32
  }
}

</mosaic_0001>

<bundles_post_ra>
// kernel: tpu_custom_call.1
= control target key start
LH: loop header
LB: loop body
LE: loop exit
PB: predicated region body
PF: predicated region fallthrough
CT: control target
= control target key end

     0   :  { %6 = vsyncpa [#allocation3], 0  ;;  %s489_s0 = inlined_call_operand.vmem [shape: f32[2,18,18], index: 0, kind: input, shape index: {}]   ;;  %s490_s1 = inlined_call_operand.hbm [shape: f32[2,16,16], index: 1, kind: output, shape index: {}]  }
   0x1   :  { %8 = vsyncpa [#allocation3 + $0x1], 0  ;;  %s382_s6 = smov 0   ;;  %s384_s7 = smov 0  }
   0x2   :  { %s386_s8 = smov 0   ;;  %s388_s9 = smov 0  }
   0x3 LB: > { %s403_s10 = sadd.s32 4294967295, %s365_s9   ;;  %s247_s11 = sadd.s32 4294967294, %s365_s9   ;;  %s365_s9 = sphi %s388_s9, %s496_s9   ;;  %s361_s8 = sphi %s386_s8, %s495_s8   ;;  %s357_s7 = sphi %s384_s7, %s494_s7   ;;  %s353_s6 = sphi %s382_s6, %s493_s6  }
   0x4   : > { %s407_s12 = sadd.s32 1, %s365_s9   ;;  %s47_s13 = sadd.s32 1, %s361_s8 }
   0x5   : > { %s44_s14 = ssub.s32 %s365_s9, %s407_s12  ;;  %p57_p0 = scmp.ne.s32.totalorder %s361_s8, %s357_s7 }
   0x6   : > { %p45_p1 = scmp.eq.s32.totalorder %s44_s14, 0  ;;  %p58_p2 = scmp.eq.s32.totalorder %s403_s10, 1 }
   0x7   : > { %p63_p3 = scmp.ne.s32.totalorder %s357_s7, %s353_s6  ;;  %p64_p4 = scmp.eq.s32.totalorder %s247_s11, 1 }
   0x8   : > { %s418_s15 = scalar_select %p45_p1, %s361_s8, %s47_s13  }
   0x9   : > { %p420_p5 = por %p58_p2, %p57_p0  ;;  %p424_p6 = por %p64_p4, %p63_p3 }
   0xa   : > { %p250_p7 = scmp.ge.s32.totalorder %s365_s9, 1  ;;  %p90_p8 = scmp.lt.s32.totalorder %s365_s9, 3 }
   0xc   : > { %p91_p9 = pnand %p250_p7, %p90_p8 }
   0xd   : > { %p110_p10 = scmp.lt.s32.totalorder (!%p91_p9), %s403_s10, 1  ;;  %s367_s23 = smov (!%p91_p9), 127   ;;  %vm148_vm0 = vcmask (!%p91_p9), 1046528   ;;  %vm158_vm1 = vcmask (!%p91_p9), 1045504   ;;  %vm168_vm2 = vcmask (!%p91_p9), 130048  }
   0xe   : > { %94 = sbr.rel (%p91_p9) target bundleno = 174 (0xae), region = 24  ;;  %s368_s24 = smov (!%p91_p9), 126  }
   0xf   : > { %s107_s25 = sand.u32 (!%p91_p9), 1, %s357_s7   ;;  %s258_s27 = sshll.u32 (!%p91_p9), %s403_s10, 8 }
  0x10   : > { %s251_s26 = sshll.u32 (!%p91_p9), %s107_s25, 4  ;;  %s442_s3 = scalar_lea.hbm (!%p91_p9), %s490_s1, %s258_s27 }
  0x11   : > { %s109_s28 = scalar_lea.vmem (!%p91_p9), [#allocation2], %s251_s26  ;;  %s448_s4 = scalar_lea.sflag (!%p91_p9), [#allocation3], %s107_s25 }
  0x12   : > { %s185_s29 = sshll.u32 (!%p91_p9), %s109_s28, 4  ;;  %s444_s29 = int_to_ptr.vmem [resolvable:$true] %s185_s29 }
  0x13   : > { %s303_s5 = scalar_lea.vmem (!%p91_p9), %s444_s29, 256 }
  0x14   : > { %p304_p11 = scmp.ne.s32.totalorder (!%p91_p9), %s444_s29, %s303_s5 }
  0x15   : > { %s111_s18 = scalar_select %p110_p10, %s403_s10, 1 }
  0x16   : > { %p305_p12 = pnand %p304_p11, %p420_p5  ;;  %s369_s10 = smov [#allocation2]  }
  0x17   : > { %s259_s19 = smul.u32 24, %s111_s18  ;;  %s307_s11 = sshll.u32 %s369_s10, 4  ;;  %s308_s11 = int_to_ptr.vmem [resolvable:$false] %s307_s11 }
  0x18   : > { %p306_p13 = pneg %p305_p12  ;;  %s309_s13 = scalar_lea.vmem %s308_s11, 512 }
  0x19   : > { %s114_s22 = scalar_lea.vmem %s489_s0, %s259_s19  ;;  %p310_p0 = scmp.lt.s32.totalorder %s444_s29, %s308_s11 }
  0x1a   : > { %v117_v0 = vld [vmem:[%s114_s22 + $0x10] sm:$0x3]  ;;  %v115_v1 = vld [vmem:[%s114_s22] sm:$0xff]  ;;  %v116_v2 = vld [vmem:[%s114_s22 + $0x8] sm:$0xff]  ;;  %p311_p1 = scmp.lt.s32.totalorder %s309_s13, %s303_s5 }
  0x1b   : > { %125 = vrot.lane.b32.xlu1 %v117_v0, %s367_s23  ;;  %121 = vrot.lane.b32.xlu0 %v115_v1, %s367_s23 }
  0x1c   : > { %p312_p2 = por %p311_p1, %p310_p0 }
  0x1e   : > { %p313_p3 = pnand %p312_p2, %p306_p13 }
  0x1f   : > { %133 = vrot.lane.b32.xlu1 %v115_v1, %s368_s24  ;;  %123 = vrot.lane.b32.xlu0 %v116_v2, %s367_s23 }
  0x23   : > { %137 = vrot.lane.b32.xlu1 %v117_v0, %s368_s24  ;;  %135 = vrot.lane.b32.xlu0 %v116_v2, %s368_s24 }
  0x8d   : > { %v126_v3 = vpop.permute.xlu1 %125  ;;  %v122_v4 = vpop.permute.xlu0 %121 }
  0x8e   : > { %v130_v5 = vmax.f32 %v115_v1, %v122_v4  ;;  %v132_v9 = vmax.f32 %v117_v0, %v126_v3 }
  0x91   : > { %v134_v6 = vpop.permute.xlu1 %133  ;;  %v124_v7 = vpop.permute.xlu0 %123 }
  0x92   : > { %v142_v8 = vmax.f32 %v130_v5, %v134_v6  ;;  %v131_v10 = vmax.f32 %v116_v2, %v124_v7 }
  0x94   : > { %v149_v15 = vrot.slane %v142_v8, 1  ;;  %v159_v20 = vrot.slane %v142_v8, 2 }
  0x95   : > { %v138_v11 = vpop.permute.xlu1 %137  ;;  %v136_v12 = vpop.permute.xlu0 %135 }
  0x96   : > { %v144_v13 = vmax.f32 %v132_v9, %v138_v11  ;;  %v143_v14 = vmax.f32 %v131_v10, %v136_v12 }
  0x98   : > { %v152_v16 = vrot.slane %v144_v13, 1  ;;  %v162_v17 = vrot.slane %v144_v13, 2  ;;  %v150_v18 = vrot.slane %v143_v14, 1  ;;  %v160_v19 = vrot.slane %v143_v14, 2 }
  0x9a   : > { %v151_v21 = vsel %vm148_vm0, %v149_v15, %v150_v18  ;;  %v153_v22 = vsel %vm148_vm0, %v150_v18, %v152_v16  ;;  %v161_v25 = vsel %vm158_vm1, %v159_v20, %v160_v19  ;;  %v163_v26 = vsel %vm158_vm1, %v160_v19, %v162_v17 }
  0x9b   : > { %v156_v23 = vmax.f32 %v142_v8, %v151_v21  ;;  %v157_v24 = vmax.f32 %v143_v14, %v153_v22 }
  0x9d   : > { %v166_v27 = vmax.f32 %v156_v23, %v161_v25  ;;  %v167_v28 = vmax.f32 %v157_v24, %v163_v26 }
  0x9f   : > { %170 = vst.msk [vmem:[%s109_s28 + $0x8] sm:$0xff] %vm168_vm2, %v167_v28  ;;  %169 = vst.msk [vmem:[%s109_s28] sm:$0xff] %vm168_vm2, %v166_v27 }
  0xa0   : > { %316 = shalt.err (!%p313_p3)
}
  0xa1   : > { %s317_s14 = scalar_lea.hbm %s442_s3, 256  ;;  %s321_s20 = scalar_lea.hbm %s490_s1, 512 }
  0xa2   : > { %p318_p4 = scmp.ne.s32.totalorder %s442_s3, %s317_s14  ;;  %p322_p9 = scmp.lt.u32.totalorder %s442_s3, %s490_s1 }
  0xa3   : > { %p323_p10 = scmp.lt.u32.totalorder %s321_s20, %s317_s14  ;;  %p325_p12 = scmp.lt.u32.totalorder %s317_s14, %s442_s3 }
  0xa4   : > { %p319_p7 = pnand %p318_p4, %p420_p5 }
  0xa5   : > { %p324_p11 = por %p323_p10, %p322_p9 }
  0xa6   : > { %p320_p8 = pneg %p319_p7 }
  0xa7   : > { %p326_p13 = por %p325_p12, %p324_p11 }
  0xa9   : > { %p327_p0 = pnand %p326_p13, %p320_p8 }
  0xab   : > { %330 = shalt.err (!%p327_p0)
}
  0xac   : > { %s370_s23 = smov 128   ;;  %s371_s24 = smov 8  }
  0xad   : > { %260 = dma.vmem_to_hbm [thread:$0]  (%p420_p5), %s444_s29, 256, %s442_s3, %s448_s4, %s370_s23, %s370_s23, %s371_s24  }
  0xae PF: > { %p266_p1 = scmp.ge.s32.totalorder %s365_s9, 2  ;;  %s200_s25 = sand.u32 1, %s353_s6  }
  0xaf   : > { %s201_s26 = scalar_lea.sflag [#allocation3], %s200_s25 }
  0xb0   : > { %p263_p2 = pnand %p266_p1, %p424_p6 }
  0xb2   : > { %348 = dma.done.wait (!%p263_p2), %s201_s26, 256  }
  0xb3   : > { %350 = vsyncadd (!%p263_p2), %s201_s26, 4294967040  ;;  %p11_p3 = scmp.ge.s32.totalorder %s407_s12, 4   ;;  %s493_s6 = smov %s357_s7 }
  0xb4   : > { %s494_s7 = smov %s361_s8  ;;  %s495_s8 = smov %s418_s15 }
  0xb5   : > { %s496_s9 = smov %s407_s12  ;;  %13 = sbr.rel (!%p11_p3) target bundleno = 3 (0x3), region = 59 }
  0xbc   :  { %206 = vsyncpa [#allocation3], 1 }
  0xbd   :  { %208 = vsyncpa [#allocation3 + $0x1], 1 }

</bundles_post_ra>
